<compile_context>
chip_gen: v6e
topology: v6e:2x2x1
jax: 0.10.0
libtpu: 0.0.40
codegen_flags: <defaults>
</compile_context>

<pallas_src>
import functools

import jax
import jax.numpy as jnp
from jax.experimental import pallas as pl
from jax.experimental.pallas import tpu as pltpu

LANES = 128
SUBLANES = 8
NUM_SLICES = 2  # leading parallel axis: uses both TensorCores on v7x.


def _cdiv(a, b):
    return -(-a // b)


def _rmse_kernel(x_ref, y_ref, o_ref, acc_ref, *, valid_rows, steps_per_slice,
                 block_rows):
    p = pl.program_id(0)          # slice (parallel) index
    i = pl.program_id(1)          # reduction step within the slice

    @pl.when(i == 0)
    def _():
        acc_ref[...] = jnp.zeros_like(acc_ref)

    row_start = (p * steps_per_slice + i) * block_rows

    def accumulate(masked):
        x = x_ref[...].astype(jnp.float32)
        y = y_ref[...].astype(jnp.float32)
        d = x - y
        if masked:
            row_ids = row_start + jax.lax.broadcasted_iota(jnp.int32, d.shape, 0)
            d = jnp.where(row_ids < valid_rows, d, 0.0)
        dd = d * d
        # Leading-axis reduce onto the (8, 128) accumulator: stays on the VPU.
        acc_ref[...] += dd.reshape(block_rows // SUBLANES, SUBLANES, LANES).sum(axis=0)

    # Fast path for fully in-bounds tiles; masked path for the ragged tail and
    # for phantom tiles introduced by the 2-way slice split.
    @pl.when(row_start + block_rows <= valid_rows)
    def _():
        accumulate(masked=False)

    @pl.when(row_start + block_rows > valid_rows)
    def _():
        accumulate(masked=True)

    @pl.when(i == pl.num_programs(1) - 1)
    def _():
        o_ref[...] = acc_ref[...]


def rmse_loss(inputs, targets, *, tile_rows=2048):
    """sqrt(mean((inputs - targets)**2)) computed in a Pallas TPU kernel."""
    assert inputs.shape == targets.shape, "RMSELoss requires matching shapes"
    total_n = int(inputs.size)

    # Flatten (free reshape, no dtype cast). Only pad when numel isn't a
    # multiple of one (8, 128) sub-tile — padded entries are equal in both
    # operands so they contribute nothing to the sum of squares.
    x = inputs.reshape(-1)
    y = targets.reshape(-1)
    subtile = SUBLANES * LANES
    rem = total_n % subtile
    if rem:
        pad = subtile - rem
        x = jnp.pad(x, (0, pad))
        y = jnp.pad(y, (0, pad))
    rows = x.size // LANES                      # always a multiple of 8
    x = x.reshape(rows, LANES)
    y = y.reshape(rows, LANES)

    block_rows = min(tile_rows, rows)           # block never exceeds the array
    assert block_rows % SUBLANES == 0
    total_tiles = _cdiv(rows, block_rows)
    steps_per_slice = _cdiv(total_tiles, NUM_SLICES)
    last_tile = total_tiles - 1

    def data_map(p, i):
        # Clamp phantom tiles of the slice split back in-bounds; the kernel
        # masks their contribution to zero.
        return (jnp.minimum(p * steps_per_slice + i, last_tile), 0)

    kernel = functools.partial(
        _rmse_kernel,
        valid_rows=rows,
        steps_per_slice=steps_per_slice,
        block_rows=block_rows,
    )

    partials = pl.pallas_call(
        kernel,
        out_shape=jax.ShapeDtypeStruct((NUM_SLICES * SUBLANES, LANES), jnp.float32),
        grid_spec=pltpu.PrefetchScalarGridSpec(
            num_scalar_prefetch=0,
            grid=(NUM_SLICES, steps_per_slice),
            in_specs=[
                pl.BlockSpec((block_rows, LANES), data_map),
                pl.BlockSpec((block_rows, LANES), data_map),
            ],
            out_specs=pl.BlockSpec((SUBLANES, LANES), lambda p, i: (p, 0)),
            scratch_shapes=[pltpu.VMEM((SUBLANES, LANES), jnp.float32)],
        ),
        compiler_params=pltpu.CompilerParams(
            dimension_semantics=("parallel", "arbitrary"),
        ),
    )(x, y)

    # Final tiny cross-lane/cross-slice reduce + mean + sqrt in XLA.
    return jnp.sqrt(partials.sum() / total_n)


if __name__ == "__main__":
    key = jax.random.PRNGKey(0)
    k1, k2 = jax.random.split(key)
    # Small NCHW-shaped example inputs (batch=2, channels=4, spatial=16x16).
    inputs = jax.random.normal(k1, (2, 4, 16, 16), dtype=jnp.float32)
    targets = jax.random.normal(k2, (2, 4, 16, 16), dtype=jnp.float32)

    loss = rmse_loss(inputs, targets)
    jax.block_until_ready(loss)

    # Sanity check against plain-JAX reference.
    ref = jnp.sqrt(jnp.mean((inputs - targets) ** 2))
    assert jnp.allclose(loss, ref, rtol=1e-5, atol=1e-6), (loss, ref)

    print("KERNEL_OK")
</pallas_src>

<mosaic_0001>
module attributes {stable_mosaic.version = 11 : i64} {
  func.func @_rmse_kernel(%arg0: i32, %arg1: i32, %arg2: memref<16x128xf32, #tpu.memory_space<vmem>>, %arg3: memref<16x128xf32, #tpu.memory_space<vmem>>, %arg4: memref<8x128xf32, #tpu.memory_space<vmem>>, %arg5: memref<8x128xf32, #tpu.memory_space<vmem>>) attributes {dimension_semantics = [#tpu.dimension_semantics<parallel>, #tpu.dimension_semantics<arbitrary>], iteration_bounds = array<i64: 2, 1>, scalar_prefetch = 0 : i64, scratch_operands = 1 : i64, tpu.core_type = #tpu.core_type<tc>, window_params = [{transform_indices = @transform_0, window_bounds = array<i64: 16, 128>}, {transform_indices = @transform_1, window_bounds = array<i64: 16, 128>}, {transform_indices = @transform_2, window_bounds = array<i64: 8, 128>}]} {
    %c0_i32 = arith.constant 0 : i32
    %0 = arith.cmpi eq, %arg1, %c0_i32 : i32
    %1 = arith.extui %0 : i1 to i32
    %c0_i32_0 = arith.constant 0 : i32
    %2 = arith.cmpi ne, %1, %c0_i32_0 : i32
    scf.if %2 {
      %cst = arith.constant 0.000000e+00 : f32
      %17 = vector.broadcast %cst : f32 to vector<8x128xf32>
      %c0 = arith.constant 0 : index
      %c0_9 = arith.constant 0 : index
      %18 = vector.load %arg5[%c0, %c0_9] : memref<8x128xf32, #tpu.memory_space<vmem>>, vector<8x128xf32>
      tpu.vector_store %arg5[%c0, %c0_9], %17 {strides = array<i32>} : memref<8x128xf32, #tpu.memory_space<vmem>>, vector<8x128xf32>,
    } else {
    }
    %c1_i32 = arith.constant 1 : i32
    %3 = arith.muli %arg0, %c1_i32 : i32
    %4 = arith.addi %3, %arg1 : i32
    %c16_i32 = arith.constant 16 : i32
    %5 = arith.muli %4, %c16_i32 : i32
    %c16_i32_1 = arith.constant 16 : i32
    %6 = arith.addi %5, %c16_i32_1 : i32
    %c16_i32_2 = arith.constant 16 : i32
    %7 = arith.cmpi sle, %6, %c16_i32_2 : i32
    %8 = arith.extui %7 : i1 to i32
    %c0_i32_3 = arith.constant 0 : i32
    %9 = arith.cmpi ne, %8, %c0_i32_3 : i32
    scf.if %9 {
      %c0 = arith.constant 0 : index
      %c0_9 = arith.constant 0 : index
      %17 = vector.load %arg2[%c0, %c0_9] : memref<16x128xf32, #tpu.memory_space<vmem>>, vector<16x128xf32>
      %c0_10 = arith.constant 0 : index
      %c0_11 = arith.constant 0 : index
      %18 = vector.load %arg3[%c0_10, %c0_11] : memref<16x128xf32, #tpu.memory_space<vmem>>, vector<16x128xf32>
      %19 = arith.subf %17, %18 : vector<16x128xf32>
      %20 = arith.mulf %19, %19 : vector<16x128xf32>
      %c0_12 = arith.constant 0 : index
      %c0_13 = arith.constant 0 : index
      %21 = vector.load %arg5[%c0_12, %c0_13] : memref<8x128xf32, #tpu.memory_space<vmem>>, vector<8x128xf32>
      %22 = vector.shape_cast %20 : vector<16x128xf32> to vector<2x8x128xf32>
      %cst = arith.constant dense<0.000000e+00> : vector<8x128xf32>
      %23 = vector.multi_reduction <add>, %22, %cst [0] : vector<2x8x128xf32> to vector<8x128xf32>
      %24 = arith.addf %21, %23 : vector<8x128xf32>
      %c0_14 = arith.constant 0 : index
      %c0_15 = arith.constant 0 : index
      %25 = vector.load %arg5[%c0_14, %c0_15] : memref<8x128xf32, #tpu.memory_space<vmem>>, vector<8x128xf32>
      tpu.vector_store %arg5[%c0_14, %c0_15], %24 {strides = array<i32>} : memref<8x128xf32, #tpu.memory_space<vmem>>, vector<8x128xf32>,
    } else {
    }
    %c16_i32_4 = arith.constant 16 : i32
    %10 = arith.addi %5, %c16_i32_4 : i32
    %c16_i32_5 = arith.constant 16 : i32
    %11 = arith.cmpi sgt, %10, %c16_i32_5 : i32
    %12 = arith.extui %11 : i1 to i32
    %c0_i32_6 = arith.constant 0 : i32
    %13 = arith.cmpi ne, %12, %c0_i32_6 : i32
    scf.if %13 {
      %c0 = arith.constant 0 : index
      %c0_9 = arith.constant 0 : index
      %17 = vector.load %arg2[%c0, %c0_9] : memref<16x128xf32, #tpu.memory_space<vmem>>, vector<16x128xf32>
      %c0_10 = arith.constant 0 : index
      %c0_11 = arith.constant 0 : index
      %18 = vector.load %arg3[%c0_10, %c0_11] : memref<16x128xf32, #tpu.memory_space<vmem>>, vector<16x128xf32>
      %19 = arith.subf %17, %18 : vector<16x128xf32>
      %20 = tpu.iota {dimensions = array<i32: 0>} : vector<16x128xi32>
      %21 = vector.broadcast %5 : i32 to vector<16x128xi32>
      %22 = arith.addi %21, %20 : vector<16x128xi32>
      %c16_i32_12 = arith.constant 16 : i32
      %23 = vector.broadcast %c16_i32_12 : i32 to vector<16x128xi32>
      %24 = arith.cmpi slt, %22, %23 : vector<16x128xi32>
      %cst = arith.constant 0.000000e+00 : f32
      %25 = vector.broadcast %cst : f32 to vector<16x128xf32>
      %26 = arith.select %24, %19, %25 : vector<16x128xi1>, vector<16x128xf32>
      %27 = arith.mulf %26, %26 : vector<16x128xf32>
      %c0_13 = arith.constant 0 : index
      %c0_14 = arith.constant 0 : index
      %28 = vector.load %arg5[%c0_13, %c0_14] : memref<8x128xf32, #tpu.memory_space<vmem>>, vector<8x128xf32>
      %29 = vector.shape_cast %27 : vector<16x128xf32> to vector<2x8x128xf32>
      %cst_15 = arith.constant dense<0.000000e+00> : vector<8x128xf32>
      %30 = vector.multi_reduction <add>, %29, %cst_15 [0] : vector<2x8x128xf32> to vector<8x128xf32>
      %31 = arith.addf %28, %30 : vector<8x128xf32>
      %c0_16 = arith.constant 0 : index
      %c0_17 = arith.constant 0 : index
      %32 = vector.load %arg5[%c0_16, %c0_17] : memref<8x128xf32, #tpu.memory_space<vmem>>, vector<8x128xf32>
      tpu.vector_store %arg5[%c0_16, %c0_17], %31 {strides = array<i32>} : memref<8x128xf32, #tpu.memory_space<vmem>>, vector<8x128xf32>,
    } else {
    }
    %c0_i32_7 = arith.constant 0 : i32
    %14 = arith.cmpi eq, %arg1, %c0_i32_7 : i32
    %15 = arith.extui %14 : i1 to i32
    %c0_i32_8 = arith.constant 0 : i32
    %16 = arith.cmpi ne, %15, %c0_i32_8 : i32
    scf.if %16 {
      %c0 = arith.constant 0 : index
      %c0_9 = arith.constant 0 : index
      %17 = vector.load %arg5[%c0, %c0_9] : memref<8x128xf32, #tpu.memory_space<vmem>>, vector<8x128xf32>
      %c0_10 = arith.constant 0 : index
      %c0_11 = arith.constant 0 : index
      %18 = vector.load %arg4[%c0_10, %c0_11] : memref<8x128xf32, #tpu.memory_space<vmem>>, vector<8x128xf32>
      tpu.vector_store %arg4[%c0_10, %c0_11], %17 {strides = array<i32>} : memref<8x128xf32, #tpu.memory_space<vmem>>, vector<8x128xf32>,
    } else {
    }
    return
  }
  func.func @transform_0(%arg0: i32, %arg1: i32) -> (i32, i32) {
    %c1_i32 = arith.constant 1 : i32
    %0 = arith.muli %arg0, %c1_i32 : i32
    %1 = arith.addi %0, %arg1 : i32
    %c0_i32 = arith.constant 0 : i32
    %2 = arith.minsi %1, %c0_i32 : i32
    %c0_i32_0 = arith.constant 0 : i32
    %c0_i32_1 = arith.constant 0 : i32
    return %2, %c0_i32_0 : i32, i32
  }
  func.func @transform_1(%arg0: i32, %arg1: i32) -> (i32, i32) {
    %c1_i32 = arith.constant 1 : i32
    %0 = arith.muli %arg0, %c1_i32 : i32
    %1 = arith.addi %0, %arg1 : i32
    %c0_i32 = arith.constant 0 : i32
    %2 = arith.minsi %1, %c0_i32 : i32
    %c0_i32_0 = arith.constant 0 : i32
    %c0_i32_1 = arith.constant 0 : i32
    return %2, %c0_i32_0 : i32, i32
  }
  func.func @transform_2(%arg0: i32, %arg1: i32) -> (i32, i32) {
    %c0_i32 = arith.constant 0 : i32
    %c0_i32_0 = arith.constant 0 : i32
    return %arg0, %c0_i32 : i32, i32
  }
}

</mosaic_0001>

<bundles_post_ra>
// kernel: tpu_custom_call.1
= control target key start
LH: loop header
LB: loop body
LE: loop exit
PB: predicated region body
PF: predicated region fallthrough
CT: control target
= control target key end

     0   :  { %7 = vsyncpa [#allocation4], 0  ;;  %s913_s0 = inlined_call_operand.hbm [shape: f32[16,128], index: 0, kind: input, shape index: {}]   ;;  %s914_s1 = inlined_call_operand.hbm [shape: f32[16,128], index: 1, kind: input, shape index: {}]   ;;  %s915_s2 = inlined_call_operand.hbm [shape: f32[16,128], index: 2, kind: output, shape index: {}]  }
   0x1   :  { %9 = vsyncpa [#allocation4 + $0x1], 0 }
   0x2   :  { %10 = vsyncpa [#allocation7], 0 }
   0x3   :  { %12 = vsyncpa [#allocation7 + $0x1], 0 }
   0x4   :  { %13 = vsyncpa [#allocation5], 0 }
   0x5   :  { %15 = vsyncpa [#allocation5 + $0x1], 0  ;;  %s711_s9 = smov 0   ;;  %s713_s10 = smov 0  }
   0x6   :  { %s715_s11 = smov 0   ;;  %s717_s12 = smov 0  }
   0x7   :  { %s719_s13 = smov 0   ;;  %s721_s14 = smov 0  }
   0x8   :  { %s723_s15 = smov 0   ;;  %s725_s16 = smov 0  }
   0x9 LB: > { %s410_s17 = sadd.s32 4294967295, %s688_s16   ;;  %s411_s18 = sadd.s32 4294967294, %s688_s16   ;;  %s688_s16 = sphi %s725_s16, %s21_s16   ;;  %s684_s15 = sphi %s723_s15, %s934_s15   ;;  %s680_s14 = sphi %s721_s14, %s933_s14   ;;  %s676_s13 = sphi %s719_s13, %s903_s13   ;;  %s672_s12 = sphi %s717_s12, %s932_s12   ;;  %s668_s11 = sphi %s715_s11, %s931_s11   ;;  %s664_s10 = sphi %s713_s10, %s930_s10   ;;  %s660_s9 = sphi %s711_s9, %s929_s9  }
   0xa   : > { %s33_s19 = sadd.s32 1, %s684_s15  ;;  %p657_p1 = scmp.ne.s32.totalorder %s676_s13, 0 }
   0xb   : > { %p35_p0 = scmp.ge.s32.totalorder %s33_s19, 2  ;;  %p54_p2 = scmp.eq.s32.totalorder %s688_s16, 0 }
   0xc   : > { %p59_p3 = scmp.ne.s32.totalorder %s676_s13, %s672_s12  ;;  %p60_p5 = scmp.eq.s32.totalorder %s410_s17, 0 }
   0xd   : > { %s936_s19 = smov (%p35_p0, %s33_s19), 0  ;;  %p757_p4 = por %p657_p1, %p54_p2 }
   0xe   : > { %p761_p6 = por %p60_p5, %p59_p3  ;;  %s101_s22 = ssub.s32 %s684_s15, %s936_s19 }
   0xf   : > { %p102_p7 = scmp.eq.s32.totalorder %s101_s22, 0  ;;  %s104_s23 = sadd.s32 1, %s668_s11 }
  0x10   : > { %s919_s21 = scalar_select %p761_p6, 1, 0 }
  0x11   : > { %s769_s24 = scalar_select %p102_p7, %s668_s11, %s104_s23  }
  0x12   : > { %p114_p8 = scmp.ne.s32.totalorder %s668_s11, %s664_s10  ;;  %p115_p9 = scmp.eq.s32.totalorder %s410_s17, 1 }
  0x13   : > { %p120_p10 = scmp.ne.s32.totalorder %s664_s10, %s660_s9  ;;  %p121_p11 = scmp.eq.s32.totalorder %s411_s18, 1 }
  0x14   : > { %p775_p12 = por %p115_p9, %p114_p8  ;;  %p450_p1 = scmp.lt.s32.totalorder %s688_s16, 2 }
  0x15   : > { %p780_p0 = por %p121_p11, %p120_p10  ;;  %s690_s27 = smov [#allocation3]  }
  0x16   : > { %s920_s25 = scalar_select %p775_p12, 1, 0 }
  0x17   : > { %s921_s26 = scalar_select %p780_p0, 1, 0 }
  0x18   : > { %s155_s28 = sshll.u32 %s690_s27, 4  ;;  %p787_p2 = pnand %p450_p1, %p757_p4  ;;  %s156_s28 = int_to_ptr.vmem [resolvable:$true] %s155_s28 }
  0x19   : > { %s527_s4 = scalar_lea.hbm %s913_s0, 256 }
  0x1a   : > { %p528_p3 = scmp.ne.s32.totalorder %s913_s0, %s527_s4  ;;  %p529_p5 = pneg %p787_p2 }
  0x1b   : > { %p534_p8 = scmp.lt.s32.totalorder %s527_s4, %s527_s4 }
  0x1c   : > { %p530_p7 = pnand %p529_p5, %p528_p3 }
  0x1e   : > { %p531_p4 = pneg %p530_p7 }
  0x20   : > { %p536_p9 = pnand %p534_p8, %p531_p4 }
  0x22   : > { %539 = shalt.err (!%p536_p9)
}
  0x23   : > { %s540_s7 = scalar_lea.vmem %s156_s28, 256  ;;  %s547_s8 = scalar_lea.vmem %s156_s28, 512 }
  0x24   : > { %p541_p10 = scmp.ne.s32.totalorder %s156_s28, %s540_s7  ;;  %p548_p13 = scmp.lt.s32.totalorder %s156_s28, %s156_s28 }
  0x25   : > { %p549_p0 = scmp.lt.s32.totalorder %s547_s8, %s540_s7 }
  0x26   : > { %p543_p11 = pnand %p541_p10, %p529_p5 }
  0x27   : > { %p550_p12 = por %p549_p0, %p548_p13 }
  0x28   : > { %p544_p1 = pneg %p543_p11 }
  0x2a   : > { %p551_p6 = pnand %p550_p12, %p544_p1 }
  0x2c   : > { %554 = shalt.err (!%p551_p6)
}
  0x2d   : > { %s691_s12 = smov 128   ;;  %s692_s17 = smov 8  }
  0x2e   : > { %442 = dma.hbm_to_vmem [thread:$0]  (!%p787_p2), %s913_s0, 256, %s156_s28, [#allocation4], %s691_s12, %s691_s12, %s692_s17  }
  0x2f   : > { %p420_p3 = scmp.ge.s32.totalorder %s688_s16, 1  ;;  %p187_p7 = scmp.lt.s32.totalorder %s688_s16, 3 }
  0x30   : > { %s693_s23 = smov [#allocation6]   ;;  %s555_s4 = scalar_lea.hbm %s914_s1, 256 }
  0x31   : > { %p812_p4 = pnand %p420_p3, %p187_p7  ;;  %s179_s27 = sshll.u32 %s693_s23, 4  ;;  %s180_s27 = int_to_ptr.vmem [resolvable:$true] %s179_s27 }
  0x32   : > { %p556_p6 = scmp.ne.s32.totalorder %s914_s1, %s555_s4  ;;  %p562_p0 = scmp.lt.s32.totalorder %s555_s4, %s555_s4 }
  0x33   : > { %s923_s22 = scalar_select %p812_p4, 1, 0 }
  0x34   : > { %p558_p12 = pnand %p556_p6, %p529_p5 }
  0x36   : > { %p559_p13 = pneg %p558_p12 }
  0x38   : > { %p564_p8 = pnand %p562_p0, %p559_p13 }
  0x3a   : > { %567 = shalt.err (!%p564_p8)
}
  0x3b   : > { %s568_s28 = scalar_lea.vmem %s180_s27, 256  ;;  %s575_s7 = scalar_lea.vmem %s180_s27, 512 }
  0x3c   : > { %p569_p9 = scmp.ne.s32.totalorder %s180_s27, %s568_s28  ;;  %p576_p1 = scmp.lt.s32.totalorder %s180_s27, %s180_s27 }
  0x3d   : > { %p577_p3 = scmp.lt.s32.totalorder %s575_s7, %s568_s28 }
  0x3e   : > { %p571_p10 = pnand %p569_p9, %p529_p5 }
  0x3f   : > { %p578_p7 = por %p577_p3, %p576_p1 }
  0x40   : > { %p572_p11 = pneg %p571_p10 }
  0x42   : > { %p579_p4 = pnand %p578_p7, %p572_p11 }
  0x44   : > { %582 = shalt.err (!%p579_p4)
}
  0x45   : > { %445 = dma.hbm_to_vmem [thread:$0]  (!%p787_p2), %s914_s1, 256, %s180_s27, [#allocation7], %s691_s12, %s691_s12, %s692_s17  }
  0x46   : > { %p924_p6 = scmp.ne.s32.totalorder %s923_s22, 0 }
  0x47   : > { %s193_s20 = sand.u32 (!%p924_p6), 1, %s676_s13   ;;  %p925_p5 = scmp.ne.s32.totalorder (!%p924_p6), %s919_s21, 0 }
  0x48   : > { %191 = sbr.rel (%p924_p6) target bundleno = 148 (0x94), region = 28  ;;  %s421_s23 = sshll.u32 (!%p924_p6), %s193_s20, 4 }
  0x49   : > { %s194_s30 = scalar_lea.sflag (!%p924_p6), [#allocation4], %s193_s20  ;;  %s836_s3 = scalar_lea.vmem (!%p924_p6), [#allocation3], %s421_s23 }
  0x4d   : > { %646 = dma.done.wait (%p925_p5), %s194_s30, 256  }
  0x4e   : > { %648 = vsyncadd (%p925_p5), %s194_s30, 4294967040  ;;  %s203_s29 = scalar_lea.sflag [#allocation7], %s193_s20  ;;  %s842_s4 = scalar_lea.vmem [#allocation6], %s421_s23 }
  0x4f   : > { %650 = dma.done.wait (%p925_p5), %s203_s29, 256  }
  0x50   : > { %652 = vsyncadd (%p925_p5), %s203_s29, 4294967040  ;;  %s229_s12 = sand.u32 1, %s664_s10   ;;  %s424_s17 = sshll.u32 %s680_s14, 4  ;;  %v694_v0 = vmov 0.0  }
  0x51   : > { %s852_s22 = sshll.u32 %s229_s12, 3  ;;  %244 = vst [vmem:[#allocation2] sm:$0xff] %v694_v0  ;;  %s247_s27 = sadd.s32 16, %s424_s17 }
  0x52   : > { %s231_s5 = scalar_lea.vmem [#allocation8], %s852_s22  ;;  %p425_p2 = scmp.gt.s32.totalorder %s247_s27, 16 }
  0x54   : > { %251 = sbr.rel (%p425_p2) target bundleno = 100 (0x64), region = 44 }
  0x59   : > { %v252_v1 = vld [vmem:[%s836_s3] sm:$0xff]  ;;  %v253_v2 = vld [vmem:[%s836_s3 + $0x8] sm:$0xff] }
  0x5a   : > { %v254_v3 = vld [vmem:[%s842_s4] sm:$0xff]  ;;  %v255_v4 = vld [vmem:[%s842_s4 + $0x8] sm:$0xff] }
  0x5b   : > { %v256_v5 = vsub.f32 %v252_v1, %v254_v3  ;;  %v257_v6 = vsub.f32 %v253_v2, %v255_v4  ;;  %v260_v9 = vld [vmem:[#allocation2] sm:$0xff] }
  0x5d   : > { %v258_v7 = vmul.f32 %v256_v5, %v256_v5  ;;  %v259_v8 = vmul.f32 %v257_v6, %v257_v6 }
  0x5f   : > { %v261_v10 = vadd.f32 %v259_v8, %v258_v7 }
  0x61   : > { %v262_v11 = vadd.f32 %v261_v10, %v260_v9 }
  0x63   : > { %263 = vst [vmem:[#allocation2] sm:$0xff] %v262_v11 }
  0x64 PF: > { %p426_p4 = scmp.le.s32.totalorder %s247_s27, 16 }
  0x66   : > { %267 = sbr.rel (%p426_p4) target bundleno = 124 (0x7c), region = 48 }
  0x6b   : > { %v268_v12 = vld [vmem:[%s836_s3] sm:$0xff]  ;;  %v274_v14 = vlaneseq  ;;  %v277_v15 = vstv %s424_s17  ;;  %v269_v16 = vld [vmem:[%s836_s3 + $0x8] sm:$0xff] }
  0x6c   : > { %v270_v13 = vld [vmem:[%s842_s4] sm:$0xff]  ;;  %v271_v17 = vld [vmem:[%s842_s4 + $0x8] sm:$0xff] }
  0x6d   : > { %v275_v18 = vshrl.u32 %v274_v14, 7  ;;  %v272_v19 = vsub.f32 %v268_v12, %v270_v13  ;;  %v273_v22 = vsub.f32 %v269_v16, %v271_v17  ;;  %v286_v28 = vld [vmem:[#allocation2] sm:$0xff] }
  0x6f   : > { %v276_v20 = vadd.s32 8, %v275_v18  ;;  %v278_v21 = vadd.s32 %v277_v15, %v275_v18 }
  0x71   : > { %v279_v23 = vadd.s32 %v277_v15, %v276_v20  ;;  %vm280_vm0 = vcmp.lt.s32.totalorder %v278_v21, 16 }
  0x72   : > { %v282_v24 = vsel %vm280_vm0, %v272_v19, 0.0 }
  0x73   : > { %vm281_vm1 = vcmp.lt.s32.totalorder %v279_v23, 16  ;;  %v284_v25 = vmul.f32 %v282_v24, %v282_v24 }
  0x74   : > { %v283_v26 = vsel %vm281_vm1, %v273_v22, 0.0 }
  0x75   : > { %v285_v27 = vmul.f32 %v283_v26, %v283_v26 }
  0x77   : > { %v287_v29 = vadd.f32 %v285_v27, %v284_v25 }
  0x79   : > { %v288_v30 = vadd.f32 %v287_v29, %v286_v28 }
  0x7b   : > { %289 = vst [vmem:[#allocation2] sm:$0xff] %v288_v30 }
  0x7c PF: > { %s428_s21 = sshll.u32 %s680_s14, 7  ;;  %s309_s8 = sshll.u32 %s231_s5, 4  ;;  %s310_s8 = int_to_ptr.vmem [resolvable:$true] %s309_s8 }
  0x7d   : > { %s307_s7 = scalar_lea.hbm %s915_s2, %s428_s21  ;;  %s296_s18 = scalar_lea.sflag [#allocation5], %s229_s12 }
  0x7e   : > { %s583_s20 = scalar_lea.vmem %s310_s8, 128  ;;  %p926_p13 = scmp.ne.s32.totalorder %s920_s25, 0 }
  0x7f   : > { %p584_p12 = scmp.ne.s32.totalorder %s310_s8, %s583_s20  ;;  %s695_s23 = smov [#allocation8]  }
  0x80   : > { %s587_s30 = sshll.u32 %s695_s23, 4  ;;  %s588_s30 = int_to_ptr.vmem [resolvable:$false] %s587_s30 }
  0x81   : > { %p585_p0 = pnand %p584_p12, %p926_p13  ;;  %s589_s14 = scalar_lea.vmem %s588_s30, 256 }
  0x82   : > { %v293_v31 = vld [vmem:[#allocation2] sm:$0xff]  ;;  %p590_p9 = scmp.lt.s32.totalorder %s310_s8, %s588_s30  ;;  %p591_p10 = scmp.lt.s32.totalorder %s589_s14, %s583_s20 }
  0x83   : > { %294 = vst [vmem:[%s231_s5] sm:$0xff] %v293_v31  ;;  %p586_p8 = pneg %p585_p0 }
  0x84   : > { %p592_p11 = por %p591_p10, %p590_p9 }
  0x86   : > { %p593_p1 = pnand %p592_p11, %p586_p8 }
  0x88   : > { %596 = shalt.err (!%p593_p1)
}
  0x89   : > { %s597_s3 = scalar_lea.hbm %s307_s7, 128  ;;  %s601_s12 = scalar_lea.hbm %s915_s2, 256 }
  0x8a   : > { %p598_p3 = scmp.ne.s32.totalorder %s307_s7, %s597_s3  ;;  %p602_p5 = scmp.lt.s32.totalorder %s307_s7, %s915_s2 }
  0x8b   : > { %p603_p2 = scmp.lt.s32.totalorder %s601_s12, %s597_s3 }
  0x8c   : > { %p599_p7 = pnand %p598_p3, %p926_p13 }
  0x8d   : > { %p604_p4 = por %p603_p2, %p602_p5 }
  0x8e   : > { %p600_p6 = pneg %p599_p7 }
  0x90   : > { %p605_p12 = pnand %p604_p4, %p600_p6 }
  0x92   : > { %608 = shalt.err (!%p605_p12)
}
  0x93   : > { %437 = dma.vmem_to_hbm [thread:$0]  (%p926_p13), %s310_s8, 128, %s307_s7, %s296_s18  }
  0x94 PF: > { %s321_s27 = sand.u32 1, %s660_s9   ;;  %p927_p0 = scmp.ne.s32.totalorder %s921_s26, 0 }
  0x95   : > { %p928_p8 = scmp.ge.s32.totalorder %s688_s16, 2  ;;  %s322_s5 = scalar_lea.sflag [#allocation5], %s321_s27 }
  0x97   : > { %p447_p9 = pnand %p928_p8, %p927_p0 }
  0x99   : > { %p448_p10 = pneg %p447_p9 }
  0x9b   : > { %654 = dma.done.wait (%p448_p10), %s322_s5, 128  }
  0x9c   : > { %656 = vsyncadd (%p448_p10), %s322_s5, 4294967168  ;;  %s21_s16 = sadd.s32 1, %s688_s16   ;;  %s929_s9 = smov %s664_s10 }
  0x9d   : > { %p18_p11 = scmp.ge.s32.totalorder %s21_s16, 4   ;;  %s930_s10 = smov %s668_s11 }
  0x9e   : > { %s931_s11 = smov %s769_s24  ;;  %s932_s12 = smov %s676_s13 }
  0x9f   : > { %s903_s13 = smov 0   ;;  %s933_s14 = smov %s684_s15 }
  0xa0   : > { %s934_s15 = smov %s936_s19  ;;  %20 = sbr.rel (!%p18_p11) target bundleno = 9 (0x9), region = 102 }
  0xa5   :  { %327 = vsyncpa [#allocation4], 1 }
  0xa6   :  { %329 = vsyncpa [#allocation4 + $0x1], 1 }
  0xa7   :  { %330 = vsyncpa [#allocation7], 1 }
  0xa8   :  { %332 = vsyncpa [#allocation7 + $0x1], 1 }
  0xa9   :  { %333 = vsyncpa [#allocation5], 1 }
  0xaa   :  { %335 = vsyncpa [#allocation5 + $0x1], 1 }

</bundles_post_ra>
